<compile_context>
chip_gen: v7x
topology: tpu7x:2x2x1
jax: 0.10.0
libtpu: 0.0.40
codegen_flags: <defaults>
</compile_context>

<pallas_src>
import jax
import jax.numpy as jnp
from jax.experimental import pallas as pl
from jax.experimental.pallas import tpu as pltpu


def _round_up(v, m):
    return (v + m - 1) // m * m


# ---------------------------------------------------------------------------
# Kernel 1: per row-tile i, accumulate acc = A[i, :] @ x over k tiles (raw
# int8 counts, f32 accumulation); at the last k step apply the 1/deg mean
# scale in f32, compute h1 = relu(agg @ W1l + x_i @ W1r + b1), and fuse the
# (reassociated) layer-2 transform T = h1 @ [W2l | W2r].
# ---------------------------------------------------------------------------
def sage_layer1_kernel(a_ref, xk_ref, xi_ref, invdeg_ref, w1l_ref, w1r_ref,
                       b1_ref, w2_ref, t_ref, acc_ref):
    k = pl.program_id(1)

    @pl.when(k == 0)
    def _():
        acc_ref[...] = jnp.zeros_like(acc_ref)

    # raw neighbor-sum partial: int8 A tile cast to bf16 (VPU, hidden by DMA)
    acc_ref[...] += jnp.dot(a_ref[...].astype(jnp.bfloat16), xk_ref[...],
                            preferred_element_type=jnp.float32)

    @pl.when(k == pl.num_programs(1) - 1)
    def _():
        # exact mean aggregation: 1/deg row scale applied once, in f32
        agg = acc_ref[...] * invdeg_ref[...]
        # fused lin_l / lin_r as two dots (keeps the aggregate in f32)
        h1 = (jnp.dot(agg, w1l_ref[...], preferred_element_type=jnp.float32)
              + jnp.dot(xi_ref[...], w1r_ref[...],
                        preferred_element_type=jnp.float32)
              + b1_ref[...])
        h1 = jnp.maximum(h1, 0.0).astype(jnp.bfloat16)          # ReLU
        # layer-2 transform-before-aggregate (fused lin_l | lin_r of conv2)
        t_ref[...] = jnp.dot(h1, w2_ref[...],
                             preferred_element_type=jnp.float32
                             ).astype(t_ref.dtype)


# ---------------------------------------------------------------------------
# Kernel 2: out[i] = (1/deg_i) * sum_k A[i, k] @ T_l[k] + T_r[i] + b2
# ---------------------------------------------------------------------------
def sage_layer2_kernel(a_ref, tl_ref, tr_ref, invdeg_ref, b2_ref,
                       out_ref, acc_ref):
    k = pl.program_id(1)

    @pl.when(k == 0)
    def _():
        acc_ref[...] = jnp.zeros_like(acc_ref)

    acc_ref[...] += jnp.dot(a_ref[...].astype(jnp.bfloat16), tl_ref[...],
                            preferred_element_type=jnp.float32)

    @pl.when(k == pl.num_programs(1) - 1)
    def _():
        out_ref[...] = (acc_ref[...] * invdeg_ref[...]
                        + tr_ref[...].astype(jnp.float32)
                        + b2_ref[...]).astype(out_ref.dtype)


def graphsage_forward(x, edge_index, params):
    """x: (N, Cin) f32; edge_index: (2, E) int32 (row 0 = src j, row 1 = dst i)."""
    n, cin = x.shape
    w1l, w1r, b1, w2l, w2r, b2 = params
    hid = w1l.shape[1]
    cout = w2l.shape[1]

    # --- padded feature dims (no silent clipping if channels > 128) ---
    F1 = _round_up(cin, 128)
    Hp = _round_up(hid, 128)
    Cp = _round_up(cout, 128)

    # --- padded node count + tile selection (big tiles, >=2 row tiles) ---
    n_pad = _round_up(n, 128) if n <= 256 else _round_up(n, 512)
    tm = 512
    while tm > 128 and (n_pad % tm != 0 or n_pad // tm < 2):
        tm //= 2
    tk = 2048
    while tk > 128 and n_pad % tk != 0:
        tk //= 2
    grid = (n_pad // tm, n_pad // tk)

    # --- un-normalized int8 adjacency + f32 degrees, built directly padded ---
    # TODO(synk): for large/sparse graphs replace the dense O(N^2) adjacency
    # with a block-sparse path (PrefetchScalarGridSpec + per-row-tile nonzero
    # block tables driving the A / x / T_l index_maps, skipping zero tiles).
    if edge_index.shape[1] > 0:
        src = edge_index[0].astype(jnp.int32)
        dst = edge_index[1].astype(jnp.int32)
        a_p = jnp.zeros((n_pad, n_pad), jnp.int8).at[dst, src].add(jnp.int8(1))
        deg = jnp.zeros((n_pad, 1), jnp.float32).at[dst, 0].add(1.0)
    else:
        a_p = jnp.zeros((n_pad, n_pad), jnp.int8)
        deg = jnp.zeros((n_pad, 1), jnp.float32)
    inv_deg = 1.0 / jnp.maximum(deg, 1.0)   # isolated nodes aggregate zeros

    # --- activations (bf16 stream; accumulation stays f32 in-kernel) ---
    x_bf = x.astype(jnp.bfloat16)
    x_p = jnp.zeros((n_pad, F1), jnp.bfloat16).at[:n, :cin].set(x_bf)

    # layer-1 weights: W1l kept f32 (pairs with the f32 aggregate), W1r bf16
    w1l_p = jnp.zeros((F1, Hp), jnp.float32).at[:cin, :hid].set(w1l)
    w1r_p = jnp.zeros((F1, Hp), jnp.bfloat16).at[:cin, :hid].set(
        w1r.astype(jnp.bfloat16))
    b1_p = jnp.zeros((1, Hp), jnp.float32).at[0, :hid].set(b1.reshape(-1))

    # fused layer-2 weight: [W2l | W2r]  (Hp, 2*Cp), bf16
    w2l_p = jnp.zeros((Hp, Cp), jnp.bfloat16).at[:hid, :cout].set(
        w2l.astype(jnp.bfloat16))
    w2r_p = jnp.zeros((Hp, Cp), jnp.bfloat16).at[:hid, :cout].set(
        w2r.astype(jnp.bfloat16))
    w2cat = jnp.concatenate([w2l_p, w2r_p], axis=1)
    b2_p = jnp.zeros((1, Cp), jnp.float32).at[0, :cout].set(b2.reshape(-1))

    cparams = pltpu.CompilerParams(
        dimension_semantics=("parallel", "arbitrary"),
        vmem_limit_bytes=32 * 1024 * 1024)
    # Note: on bandwidth-starved v5e, pipeline_mode=pl.Buffered(3) on the A /
    # xk / T_l BlockSpecs can hide a bit more DMA latency; near-zero on
    # v6e/v7x so it is left at the default depth here.

    # ---- layer 1 (+ ReLU) fused with layer-2 transform: T = relu(...) @ W2cat
    t = pl.pallas_call(
        sage_layer1_kernel,
        out_shape=jax.ShapeDtypeStruct((n_pad, 2 * Cp), jnp.bfloat16),
        grid=grid,
        in_specs=[
            pl.BlockSpec((tm, tk), lambda i, k: (i, k)),       # A tile (int8)
            pl.BlockSpec((tk, F1), lambda i, k: (k, 0)),       # x (neighbors)
            pl.BlockSpec((tm, F1), lambda i, k: (i, 0)),       # x (self)
            pl.BlockSpec((tm, 1), lambda i, k: (i, 0)),        # 1/deg
            pl.BlockSpec((F1, Hp), lambda i, k: (0, 0)),       # W1l (f32)
            pl.BlockSpec((F1, Hp), lambda i, k: (0, 0)),       # W1r (bf16)
            pl.BlockSpec((1, Hp), lambda i, k: (0, 0)),        # b1
            pl.BlockSpec((Hp, 2 * Cp), lambda i, k: (0, 0)),   # W2cat
        ],
        out_specs=pl.BlockSpec((tm, 2 * Cp), lambda i, k: (i, 0)),
        scratch_shapes=[pltpu.VMEM((tm, F1), jnp.float32)],
        compiler_params=cparams,
    )(a_p, x_p, x_p, inv_deg, w1l_p, w1r_p, b1_p, w2cat)

    # ---- layer 2 aggregation: out = (1/deg) * (A @ T_l) + T_r + b2 ----
    out_pad = pl.pallas_call(
        sage_layer2_kernel,
        out_shape=jax.ShapeDtypeStruct((n_pad, Cp), jnp.float32),
        grid=grid,
        in_specs=[
            pl.BlockSpec((tm, tk), lambda i, k: (i, k)),       # A tile (int8)
            pl.BlockSpec((tk, Cp), lambda i, k: (k, 0)),       # T_l (neighbors)
            pl.BlockSpec((tm, Cp), lambda i, k: (i, 1)),       # T_r (self)
            pl.BlockSpec((tm, 1), lambda i, k: (i, 0)),        # 1/deg
            pl.BlockSpec((1, Cp), lambda i, k: (0, 0)),        # b2
        ],
        out_specs=pl.BlockSpec((tm, Cp), lambda i, k: (i, 0)),
        scratch_shapes=[pltpu.VMEM((tm, Cp), jnp.float32)],
        compiler_params=cparams,
    )(a_p, t, t, inv_deg, b2_p)

    out = out_pad[:n, :cout]
    # matches x.squeeze() of the torch module for Cout == 1, but only squeezes
    # the feature axis (keeps the node axis even if N == 1)
    return out[:, 0] if cout == 1 else out


def init_params(key, in_channels, hidden_channels, out_channels):
    ks = jax.random.split(key, 6)
    scale1 = 1.0 / jnp.sqrt(in_channels)
    scale2 = 1.0 / jnp.sqrt(hidden_channels)
    w1l = jax.random.uniform(ks[0], (in_channels, hidden_channels),
                             jnp.float32, -scale1, scale1)
    w1r = jax.random.uniform(ks[1], (in_channels, hidden_channels),
                             jnp.float32, -scale1, scale1)
    b1 = jax.random.uniform(ks[2], (1, hidden_channels),
                            jnp.float32, -scale1, scale1)
    w2l = jax.random.uniform(ks[3], (hidden_channels, out_channels),
                             jnp.float32, -scale2, scale2)
    w2r = jax.random.uniform(ks[4], (hidden_channels, out_channels),
                             jnp.float32, -scale2, scale2)
    b2 = jax.random.uniform(ks[5], (1, out_channels),
                            jnp.float32, -scale2, scale2)
    return (w1l, w1r, b1, w2l, w2r, b2)


def reference_forward(x, edge_index, params):
    """Pure-JAX f32 reference of the same semantics (for a sanity check)."""
    n = x.shape[0]
    w1l, w1r, b1, w2l, w2r, b2 = params
    src, dst = edge_index[0], edge_index[1]
    adj = jnp.zeros((n, n), jnp.float32).at[dst, src].add(1.0)
    deg = jnp.sum(adj, axis=1, keepdims=True)
    a = adj / jnp.maximum(deg, 1.0)
    h1 = jnp.maximum(a @ x @ w1l + x @ w1r + b1, 0.0)
    out = a @ h1 @ w2l + h1 @ w2r + b2
    return out[:, 0]


if __name__ == "__main__":
    key = jax.random.PRNGKey(0)
    k_x, k_p = jax.random.split(key)

    # small, module-consistent shapes: 8 players, 3 input stats, hidden 32, 1 output
    num_nodes = 8
    in_channels, hidden_channels, out_channels = 3, 32, 1

    x = jax.random.normal(k_x, (num_nodes, in_channels), jnp.float32)

    # deterministic ring graph (both directions) as the edge_index
    src = jnp.arange(num_nodes, dtype=jnp.int32)
    dst = (src + 1) % num_nodes
    edge_index = jnp.concatenate(
        [jnp.stack([src, dst]), jnp.stack([dst, src])], axis=1)  # (2, 2N)

    params = init_params(k_p, in_channels, hidden_channels, out_channels)

    out = graphsage_forward(x, edge_index, params)
    jax.block_until_ready(out)
    assert out.shape == (num_nodes,)

    # tighter tolerance than before: 1/deg and the aggregate now stay in f32;
    # residual error is bf16 rounding of x / weights / T only
    ref = reference_forward(x, edge_index, params)
    assert jnp.allclose(out, ref, atol=5e-2, rtol=5e-2)

    print("KERNEL_OK")
</pallas_src>

<mosaic_0001>
module attributes {stable_mosaic.version = 11 : i64} {
  func.func @sage_layer1_kernel(%arg0: i32, %arg1: i32, %arg2: memref<128x128xi8, #tpu.memory_space<vmem>>, %arg3: memref<128x128xbf16, #tpu.memory_space<vmem>>, %arg4: memref<128x128xbf16, #tpu.memory_space<vmem>>, %arg5: memref<128x1xf32, #tpu.memory_space<vmem>>, %arg6: memref<128x128xf32, #tpu.memory_space<vmem>>, %arg7: memref<128x128xbf16, #tpu.memory_space<vmem>>, %arg8: memref<1x128xf32, #tpu.memory_space<vmem>>, %arg9: memref<128x256xbf16, #tpu.memory_space<vmem>>, %arg10: memref<128x256xbf16, #tpu.memory_space<vmem>>, %arg11: memref<128x128xf32, #tpu.memory_space<vmem>>) attributes {dimension_semantics = [#tpu.dimension_semantics<parallel>, #tpu.dimension_semantics<arbitrary>], iteration_bounds = array<i64: 1, 1>, scalar_prefetch = 0 : i64, scratch_operands = 1 : i64, tpu.core_type = #tpu.core_type<tc>, window_params = [{transform_indices = @transform_0, window_bounds = array<i64: 128, 128>}, {transform_indices = @transform_1, window_bounds = array<i64: 128, 128>}, {transform_indices = @transform_2, window_bounds = array<i64: 128, 128>}, {transform_indices = @transform_3, window_bounds = array<i64: 128, 1>}, {pipeline_mode = #tpu.pipeline_mode<synchronous>, transform_indices = @transform_4, window_bounds = array<i64: 128, 128>}, {pipeline_mode = #tpu.pipeline_mode<synchronous>, transform_indices = @transform_5, window_bounds = array<i64: 128, 128>}, {pipeline_mode = #tpu.pipeline_mode<synchronous>, transform_indices = @transform_6, window_bounds = array<i64: 1, 128>}, {pipeline_mode = #tpu.pipeline_mode<synchronous>, transform_indices = @transform_7, window_bounds = array<i64: 128, 256>}, {transform_indices = @transform_8, window_bounds = array<i64: 128, 256>}]} {
    %c0_i32 = arith.constant 0 : i32
    %0 = arith.cmpi eq, %arg1, %c0_i32 : i32
    %1 = arith.extui %0 : i1 to i32
    %c0_i32_0 = arith.constant 0 : i32
    %2 = arith.cmpi ne, %1, %c0_i32_0 : i32
    scf.if %2 {
      %cst_10 = arith.constant 0.000000e+00 : f32
      %13 = vector.broadcast %cst_10 : f32 to vector<128x128xf32>
      %c0_11 = arith.constant 0 : index
      %c0_12 = arith.constant 0 : index
      %14 = vector.load %arg11[%c0_11, %c0_12] : memref<128x128xf32, #tpu.memory_space<vmem>>, vector<128x128xf32>
      tpu.vector_store %arg11[%c0_11, %c0_12], %13 {strides = array<i32>} : memref<128x128xf32, #tpu.memory_space<vmem>>, vector<128x128xf32>,
    } else {
    }
    %c0 = arith.constant 0 : index
    %c0_1 = arith.constant 0 : index
    %3 = vector.load %arg11[%c0, %c0_1] : memref<128x128xf32, #tpu.memory_space<vmem>>, vector<128x128xf32>
    %c0_2 = arith.constant 0 : index
    %c0_3 = arith.constant 0 : index
    %4 = vector.load %arg2[%c0_2, %c0_3] : memref<128x128xi8, #tpu.memory_space<vmem>>, vector<128x128xi8>
    %5 = arith.sitofp %4 : vector<128x128xi8> to vector<128x128xbf16>
    %c0_4 = arith.constant 0 : index
    %c0_5 = arith.constant 0 : index
    %6 = vector.load %arg3[%c0_4, %c0_5] : memref<128x128xbf16, #tpu.memory_space<vmem>>, vector<128x128xbf16>
    %cst = arith.constant dense<0.000000e+00> : vector<128x128xf32>
    %7 = tpu.matmul %5, %6, %cst {dimension_numbers = #tpu.dot_dimension_numbers<[1], [0], [0], [1], [0, 0, 1, 1], [], []>} : vector<128x128xbf16>, vector<128x128xbf16>, vector<128x128xf32> -> vector<128x128xf32>
    %8 = arith.addf %3, %7 : vector<128x128xf32>
    %c0_6 = arith.constant 0 : index
    %c0_7 = arith.constant 0 : index
    %9 = vector.load %arg11[%c0_6, %c0_7] : memref<128x128xf32, #tpu.memory_space<vmem>>, vector<128x128xf32>
    tpu.vector_store %arg11[%c0_6, %c0_7], %8 {strides = array<i32>} : memref<128x128xf32, #tpu.memory_space<vmem>>, vector<128x128xf32>,
    %c0_i32_8 = arith.constant 0 : i32
    %10 = arith.cmpi eq, %arg1, %c0_i32_8 : i32
    %11 = arith.extui %10 : i1 to i32
    %c0_i32_9 = arith.constant 0 : i32
    %12 = arith.cmpi ne, %11, %c0_i32_9 : i32
    scf.if %12 {
      %c0_10 = arith.constant 0 : index
      %c0_11 = arith.constant 0 : index
      %13 = vector.load %arg11[%c0_10, %c0_11] : memref<128x128xf32, #tpu.memory_space<vmem>>, vector<128x128xf32>
      %c0_12 = arith.constant 0 : index
      %c0_13 = arith.constant 0 : index
      %14 = vector.load %arg5[%c0_12, %c0_13] : memref<128x1xf32, #tpu.memory_space<vmem>>, vector<128x1xf32>
      %15 = vector.broadcast %14 : vector<128x1xf32> to vector<128x128xf32>
      %16 = arith.mulf %13, %15 : vector<128x128xf32>
      %c0_14 = arith.constant 0 : index
      %c0_15 = arith.constant 0 : index
      %17 = vector.load %arg6[%c0_14, %c0_15] : memref<128x128xf32, #tpu.memory_space<vmem>>, vector<128x128xf32>
      %cst_16 = arith.constant dense<0.000000e+00> : vector<128x128xf32>
      %18 = tpu.matmul %16, %17, %cst_16 {dimension_numbers = #tpu.dot_dimension_numbers<[1], [0], [0], [1], [0, 0, 1, 1], [], []>} : vector<128x128xf32>, vector<128x128xf32>, vector<128x128xf32> -> vector<128x128xf32>
      %c0_17 = arith.constant 0 : index
      %c0_18 = arith.constant 0 : index
      %19 = vector.load %arg4[%c0_17, %c0_18] : memref<128x128xbf16, #tpu.memory_space<vmem>>, vector<128x128xbf16>
      %c0_19 = arith.constant 0 : index
      %c0_20 = arith.constant 0 : index
      %20 = vector.load %arg7[%c0_19, %c0_20] : memref<128x128xbf16, #tpu.memory_space<vmem>>, vector<128x128xbf16>
      %cst_21 = arith.constant dense<0.000000e+00> : vector<128x128xf32>
      %21 = tpu.matmul %19, %20, %cst_21 {dimension_numbers = #tpu.dot_dimension_numbers<[1], [0], [0], [1], [0, 0, 1, 1], [], []>} : vector<128x128xbf16>, vector<128x128xbf16>, vector<128x128xf32> -> vector<128x128xf32>
      %22 = arith.addf %18, %21 : vector<128x128xf32>
      %c0_22 = arith.constant 0 : index
      %c0_23 = arith.constant 0 : index
      %23 = vector.load %arg8[%c0_22, %c0_23] : memref<1x128xf32, #tpu.memory_space<vmem>>, vector<1x128xf32>
      %24 = vector.broadcast %23 : vector<1x128xf32> to vector<128x128xf32>
      %25 = arith.addf %22, %24 : vector<128x128xf32>
      %cst_24 = arith.constant 0.000000e+00 : f32
      %26 = vector.broadcast %cst_24 : f32 to vector<128x128xf32>
      %27 = arith.maximumf %25, %26 : vector<128x128xf32>
      %28 = arith.truncf %27 : vector<128x128xf32> to vector<128x128xbf16>
      %c0_25 = arith.constant 0 : index
      %c0_26 = arith.constant 0 : index
      %29 = vector.load %arg9[%c0_25, %c0_26] : memref<128x256xbf16, #tpu.memory_space<vmem>>, vector<128x256xbf16>
      %cst_27 = arith.constant dense<0.000000e+00> : vector<128x256xf32>
      %30 = tpu.matmul %28, %29, %cst_27 {dimension_numbers = #tpu.dot_dimension_numbers<[1], [0], [0], [1], [0, 0, 1, 1], [], []>} : vector<128x128xbf16>, vector<128x256xbf16>, vector<128x256xf32> -> vector<128x256xf32>
      %31 = arith.truncf %30 : vector<128x256xf32> to vector<128x256xbf16>
      %c0_28 = arith.constant 0 : index
      %c0_29 = arith.constant 0 : index
      %32 = vector.load %arg10[%c0_28, %c0_29] : memref<128x256xbf16, #tpu.memory_space<vmem>>, vector<128x256xbf16>
      tpu.vector_store %arg10[%c0_28, %c0_29], %31 {strides = array<i32>} : memref<128x256xbf16, #tpu.memory_space<vmem>>, vector<128x256xbf16>,
    } else {
    }
    return
  }
  func.func @transform_0(%arg0: i32, %arg1: i32) -> (i32, i32) {
    %c0_i32 = arith.constant 0 : i32
    return %arg0, %arg1 : i32, i32
  }
  func.func @transform_1(%arg0: i32, %arg1: i32) -> (i32, i32) {
    %c0_i32 = arith.constant 0 : i32
    %c0_i32_0 = arith.constant 0 : i32
    return %arg1, %c0_i32 : i32, i32
  }
  func.func @transform_2(%arg0: i32, %arg1: i32) -> (i32, i32) {
    %c0_i32 = arith.constant 0 : i32
    %c0_i32_0 = arith.constant 0 : i32
    return %arg0, %c0_i32 : i32, i32
  }
  func.func @transform_3(%arg0: i32, %arg1: i32) -> (i32, i32) {
    %c0_i32 = arith.constant 0 : i32
    %c0_i32_0 = arith.constant 0 : i32
    return %arg0, %c0_i32 : i32, i32
  }
  func.func @transform_4(%arg0: i32, %arg1: i32) -> (i32, i32) {
    %c0_i32 = arith.constant 0 : i32
    %c0_i32_0 = arith.constant 0 : i32
    %c0_i32_1 = arith.constant 0 : i32
    return %c0_i32, %c0_i32_0 : i32, i32
  }
  func.func @transform_5(%arg0: i32, %arg1: i32) -> (i32, i32) {
    %c0_i32 = arith.constant 0 : i32
    %c0_i32_0 = arith.constant 0 : i32
    %c0_i32_1 = arith.constant 0 : i32
    return %c0_i32, %c0_i32_0 : i32, i32
  }
  func.func @transform_6(%arg0: i32, %arg1: i32) -> (i32, i32) {
    %c0_i32 = arith.constant 0 : i32
    %c0_i32_0 = arith.constant 0 : i32
    %c0_i32_1 = arith.constant 0 : i32
    return %c0_i32, %c0_i32_0 : i32, i32
  }
  func.func @transform_7(%arg0: i32, %arg1: i32) -> (i32, i32) {
    %c0_i32 = arith.constant 0 : i32
    %c0_i32_0 = arith.constant 0 : i32
    %c0_i32_1 = arith.constant 0 : i32
    return %c0_i32, %c0_i32_0 : i32, i32
  }
  func.func @transform_8(%arg0: i32, %arg1: i32) -> (i32, i32) {
    %c0_i32 = arith.constant 0 : i32
    %c0_i32_0 = arith.constant 0 : i32
    return %arg0, %c0_i32 : i32, i32
  }
}

</mosaic_0001>

<bundles_post_ra>
// kernel: tpu_custom_call.1
= control target key start
LH: loop header
LB: loop body
LE: loop exit
PB: predicated region body
PF: predicated region fallthrough
CT: control target
= control target key end

     0   :  { %13 = vsyncpa [#allocation4], 0  ;;  %s2040_s0 = inlined_call_operand.hbm [shape: s8[128,128], index: 0, kind: input, shape index: {}]   ;;  %s2041_s1 = inlined_call_operand.hbm [shape: bf16[128,128], index: 1, kind: input, shape index: {}]   ;;  %s2042_s2 = inlined_call_operand.hbm [shape: bf16[128,128], index: 2, kind: input, shape index: {}]   ;;  %s2043_s3 = inlined_call_operand.vmem [shape: f32[128,1], index: 3, kind: input, shape index: {}]   ;;  %s2044_s4 = inlined_call_operand.vmem [shape: f32[128,128], index: 4, kind: input, shape index: {}]   ;;  %s2045_s5 = inlined_call_operand.hbm [shape: bf16[128,128], index: 5, kind: input, shape index: {}]   ;;  %s2046_s6 = inlined_call_operand.vmem [shape: f32[1,128], index: 6, kind: input, shape index: {}]   ;;  %s2047_s7 = inlined_call_operand.hbm [shape: bf16[128,256], index: 7, kind: input, shape index: {}]   ;;  %s2048_s8 = inlined_call_operand.hbm [shape: bf16[128,256], index: 8, kind: output, shape index: {}]  }
   0x1   :  { %14 = vsyncpa [#allocation7], 0 }
   0x2   :  { %15 = vsyncpa [#allocation10], 0 }
   0x3   :  { %16 = vsyncpa [#allocation5], 0  ;;  %s1750_s27 = smov [#allocation6]   ;;  %s1610_s9 = scalar_lea.hbm %s2041_s1, 1024 }
   0x4   :  { %s34_s28 = sshll.u32 %s1750_s27, 4  ;;  %p1611_p0 = scmp.ne.s32.totalorder %s2041_s1, %s1610_s9  ;;  %s35_s28 = int_to_ptr.vmem [resolvable:$true] %s34_s28 }
   0x5   :  { %p1614_p1 = scmp.lt.u32.totalorder %s1610_s9, %s2041_s1 }
   0x7   :  { %p1616_p2 = pnand %p1614_p1, %p1611_p0 }
   0x9   :  { %1619 = shalt.err (!%p1616_p2)
}
   0xa   :  { %s1620_s14 = scalar_lea.vmem %s35_s28, 1024  ;;  %p1625_p4 = scmp.lt.s32.totalorder %s35_s28, %s35_s28 }
   0xb   :  { %p1621_p3 = scmp.ne.s32.totalorder %s35_s28, %s1620_s14  ;;  %p1626_p5 = scmp.lt.s32.totalorder %s1620_s14, %s1620_s14 }
   0xd   :  { %p1627_p6 = por %p1626_p5, %p1625_p4 }
   0xf   :  { %p1628_p7 = pnand %p1627_p6, %p1621_p3 }
  0x11   :  { %1631 = shalt.err (!%p1628_p7)
}
  0x12   :  { %s1751_s15 = smov 64   ;;  %s1752_s16 = smov 4  }
  0x13   :  { %40 = dma.hbm_to_vmem [thread:$0]  %s2041_s1, 1024, %s35_s28, [#allocation7], %s1751_s15, %s1751_s15, %s1752_s16  }
  0x14   :  { %s1753_s19 = smov [#allocation9]   ;;  %s1754_s21 = smov [#allocation3]  }
  0x15   :  { %s62_s20 = sshll.u32 %s1753_s19, 4  ;;  %s22_s22 = sshll.u32 %s1754_s21, 4  ;;  %s63_s20 = int_to_ptr.vmem [resolvable:$true] %s62_s20  ;;  %s23_s22 = int_to_ptr.vmem [resolvable:$true] %s22_s22 }
  0x16   :  { %s1632_s25 = scalar_lea.hbm %s2045_s5, 1024 }
  0x17   :  { %p1633_p8 = scmp.ne.s32.totalorder %s2045_s5, %s1632_s25  ;;  %p1636_p9 = scmp.lt.u32.totalorder %s1632_s25, %s2045_s5 }
  0x19   :  { %p1638_p10 = pnand %p1636_p9, %p1633_p8 }
  0x1b   :  { %1641 = shalt.err (!%p1638_p10)
}
  0x1c   :  { %s1642_s1 = scalar_lea.vmem %s63_s20, 1024  ;;  %p1647_p12 = scmp.lt.s32.totalorder %s63_s20, %s63_s20 }
  0x1d   :  { %p1643_p11 = scmp.ne.s32.totalorder %s63_s20, %s1642_s1  ;;  %p1648_p13 = scmp.lt.s32.totalorder %s1642_s1, %s1642_s1 }
  0x1f   :  { %p1649_p0 = por %p1648_p13, %p1647_p12 }
  0x21   :  { %p1650_p1 = pnand %p1649_p0, %p1643_p11 }
  0x23   :  { %1653 = shalt.err (!%p1650_p1)
}
  0x24   :  { %68 = dma.hbm_to_vmem [thread:$0]  %s2045_s5, 1024, %s63_s20, [#allocation10], %s1751_s15, %s1751_s15, %s1752_s16  }
  0x25   :  { %s1654_s12 = scalar_lea.hbm %s2040_s0, 512 }
  0x26   :  { %p1655_p2 = scmp.ne.s32.totalorder %s2040_s0, %s1654_s12  ;;  %p1658_p3 = scmp.lt.u32.totalorder %s1654_s12, %s2040_s0 }
  0x28   :  { %p1660_p4 = pnand %p1658_p3, %p1655_p2 }
  0x2a   :  { %1663 = shalt.err (!%p1660_p4)
}
  0x2b   :  { %s1664_s19 = scalar_lea.vmem %s23_s22, 512  ;;  %p1669_p6 = scmp.lt.s32.totalorder %s23_s22, %s23_s22 }
  0x2c   :  { %p1665_p5 = scmp.ne.s32.totalorder %s23_s22, %s1664_s19  ;;  %p1670_p7 = scmp.lt.s32.totalorder %s1664_s19, %s1664_s19 }
  0x2e   :  { %p1671_p8 = por %p1670_p7, %p1669_p6 }
  0x30   :  { %p1672_p9 = pnand %p1671_p8, %p1665_p5 }
  0x32   :  { %1675 = shalt.err (!%p1672_p9)
}
  0x33   :  { %s1755_s5 = smov 128   ;;  %s1756_s20 = smov 8  }
  0x34   :  { %28 = dma.hbm_to_vmem [thread:$0]  %s2040_s0, 512, %s23_s22, [#allocation4], %s1755_s5, %s1755_s5, %s1756_s20  }
  0x35   :  { %s1757_s24 = smov [#allocation8]   ;;  %s1758_s26 = smov [#allocation11]  }
  0x36   :  { %s46_s25 = sshll.u32 %s1757_s24, 4  ;;  %s76_s27 = sshll.u32 %s1758_s26, 4  ;;  %s47_s25 = int_to_ptr.vmem [resolvable:$true] %s46_s25  ;;  %s77_s27 = int_to_ptr.vmem [resolvable:$true] %s76_s27 }
  0x37   :  { %s1676_s1 = scalar_lea.hbm %s2042_s2, 1024 }
  0x38   :  { %p1677_p10 = scmp.ne.s32.totalorder %s2042_s2, %s1676_s1  ;;  %p1680_p11 = scmp.lt.u32.totalorder %s1676_s1, %s2042_s2 }
  0x3a   :  { %p1682_p12 = pnand %p1680_p11, %p1677_p10 }
  0x3c   :  { %1685 = shalt.err (!%p1682_p12)
}
  0x3d   :  { %s1686_s0 = scalar_lea.vmem %s47_s25, 1024  ;;  %p1691_p0 = scmp.lt.s32.totalorder %s47_s25, %s47_s25 }
  0x3e   :  { %p1687_p13 = scmp.ne.s32.totalorder %s47_s25, %s1686_s0  ;;  %p1692_p1 = scmp.lt.s32.totalorder %s1686_s0, %s1686_s0 }
  0x40   :  { %p1693_p2 = por %p1692_p1, %p1691_p0 }
  0x42   :  { %p1694_p3 = pnand %p1693_p2, %p1687_p13 }
  0x44   :  { %1697 = shalt.err (!%p1694_p3)
}
  0x45   :  { %52 = dma.hbm_to_vmem [thread:$0]  %s2042_s2, 1024, %s47_s25, [#allocation7], %s1751_s15, %s1751_s15, %s1752_s16  }
  0x46   :  { %s1698_s17 = scalar_lea.hbm %s2047_s7, 2048 }
  0x47   :  { %p1699_p4 = scmp.ne.s32.totalorder %s2047_s7, %s1698_s17  ;;  %p1702_p5 = scmp.lt.u32.totalorder %s1698_s17, %s2047_s7 }
  0x49   :  { %p1704_p6 = pnand %p1702_p5, %p1699_p4 }
  0x4b   :  { %1707 = shalt.err (!%p1704_p6)
}
  0x4c   :  { %s1708_s24 = scalar_lea.vmem %s77_s27, 2048  ;;  %p1713_p8 = scmp.lt.s32.totalorder %s77_s27, %s77_s27 }
  0x4d   :  { %p1709_p7 = scmp.ne.s32.totalorder %s77_s27, %s1708_s24  ;;  %p1714_p9 = scmp.lt.s32.totalorder %s1708_s24, %s1708_s24 }
  0x4f   :  { %p1715_p10 = por %p1714_p9, %p1713_p8 }
  0x51   :  { %p1716_p11 = pnand %p1715_p10, %p1709_p7 }
  0x53   :  { %1719 = shalt.err (!%p1716_p11)
}
  0x54   :  { %82 = dma.hbm_to_vmem [thread:$0]  %s2047_s7, 2048, %s77_s27, [#allocation10], %s1755_s5, %s1755_s5, %s1756_s20  }
  0x55   :  { %1742 = dma.done.wait [#allocation4], 512  }
  0x56   :  { %1743 = vsyncadd [#allocation4], 4294966784 }
  0x57   :  { %1744 = dma.done.wait [#allocation7], 2048  }
  0x58   :  { %1745 = vsyncadd [#allocation7], 4294965248 }
  0x59   :  { %1746 = dma.done.wait [#allocation10], 3072  }
  0x5a   :  { %1747 = vsyncadd [#allocation10], 4294964224  ;;  %v1759_v0 = vmov 0   ;;  %v1562_v1 = vld [vmem:[#allocation6] sm:$0xff]   ;;  %v1563_v2 = vld [vmem:[#allocation6 + $0x8] sm:$0xff]  }
  0x5b   :  { %1560 = vset.pattern.permute.xlu0 %v1759_v0  ;;  %1561 = vset.pattern.permute.xlu1 %v1759_v0  ;;  %v1564_v3 = vld [vmem:[#allocation6 + $0x10] sm:$0xff]   ;;  %v1565_v4 = vld [vmem:[#allocation6 + $0x18] sm:$0xff]   ;;  %v1883_v5 = vld [vmem:[#allocation3] sm:$0xff] }
  0x5c   :  { %1381 = vmatprep.subr.bf16.mxu0 %v1562_v1  ;;  %v139_v6 = vunpack.c.l.s8.bf16 %v1883_v5  ;;  %v359_v7 = vld [vmem:[%s2043_s3] sm:$0xff]  ;;  %v361_v8 = vld [vmem:[%s2043_s3 + $0x10] sm:$0xff]  ;;  %v360_v9 = vld [vmem:[%s2043_s3 + $0x8] sm:$0xff]  ;;  %v140_v35 = vunpack.c.h.s8.bf16 %v1883_v5 }
  0x5d   :  { %1382 = vmatpush3.bf16.msra.mxu0 %v1562_v1  ;;  %377 = vperm.xlu0 %1560, %v359_v7   ;;  %v362_v10 = vld [vmem:[%s2043_s3 + $0x18] sm:$0xff]  ;;  %v1566_v11 = vld [vmem:[#allocation6 + $0x20] sm:$0xff]   ;;  %v364_v13 = vld [vmem:[%s2043_s3 + $0x28] sm:$0xff] }
  0x5e   :  { %1383 = vmatprep.subr.bf16.mxu0 %v1563_v2  ;;  %387 = vperm.xlu1 %1561, %v361_v8   ;;  %v363_v12 = vld [vmem:[%s2043_s3 + $0x20] sm:$0xff]  ;;  %v1567_v15 = vld [vmem:[#allocation6 + $0x28] sm:$0xff]   ;;  %v365_v17 = vld [vmem:[%s2043_s3 + $0x30] sm:$0xff] }
  0x5f   :  { %1397 = vmatprep.mubr.bf16.mxu0 %v139_v6  ;;  %v1570_v14 = vld [vmem:[#allocation9] sm:$0xff]   ;;  %v1571_v16 = vld [vmem:[#allocation9 + $0x8] sm:$0xff]   ;;  %v366_v18 = vld [vmem:[%s2043_s3 + $0x38] sm:$0xff] }
  0x60   :  { %1413 = vmatprep.subr.bf16.mxu1 %v1570_v14  ;;  %v1568_v19 = vld [vmem:[#allocation6 + $0x30] sm:$0xff]   ;;  %v367_v21 = vld [vmem:[%s2043_s3 + $0x40] sm:$0xff]  ;;  %v368_v22 = vld [vmem:[%s2043_s3 + $0x48] sm:$0xff] }
  0x61   :  { %1384 = vmatpush3.bf16.msra.mxu0 %v1563_v2  ;;  %382 = vperm.xlu0 %1560, %v360_v9   ;;  %v1572_v20 = vld [vmem:[#allocation9 + $0x10] sm:$0xff]   ;;  %v1569_v23 = vld [vmem:[#allocation6 + $0x38] sm:$0xff]   ;;  %v471_v27 = vld [vmem:[%s2044_s4] sm:$0xff] }
  0x62   :  { %1385 = vmatprep.subr.bf16.mxu0 %v1564_v3  ;;  %392 = vperm.xlu1 %1561, %v362_v10   ;;  %v1573_v24 = vld [vmem:[#allocation9 + $0x18] sm:$0xff]   ;;  %v369_v25 = vld [vmem:[%s2043_s3 + $0x50] sm:$0xff]  ;;  %v472_v28 = vld [vmem:[%s2044_s4 + $0x8] sm:$0xff] }
  0x63   :  { %1414 = vmatpush3.bf16.msra.mxu1 %v1570_v14  ;;  %v370_v26 = vld [vmem:[%s2043_s3 + $0x58] sm:$0xff]  ;;  %v136_v29 = vld [vmem:[#allocation3 + $0x8] sm:$0xff]  ;;  %v1574_v30 = vld [vmem:[#allocation9 + $0x20] sm:$0xff]   ;;  %v1501_v31 = vpack.c.bf16 %v472_v28, %v471_v27 }
  0x64   :  { %1415 = vmatprep.subr.bf16.mxu1 %v1571_v16  ;;  %v371_v32 = vld [vmem:[%s2043_s3 + $0x60] sm:$0xff]  ;;  %v473_v33 = vld [vmem:[%s2044_s4 + $0x10] sm:$0xff]  ;;  %v474_v34 = vld [vmem:[%s2044_s4 + $0x18] sm:$0xff]  ;;  %v141_v37 = vunpack.c.l.s8.bf16 %v136_v29  ;;  %v142_v47 = vunpack.c.h.s8.bf16 %v136_v29 }
  0x65   :  { %1386 = vmatpush3.bf16.msra.mxu0 %v1564_v3  ;;  %397 = vperm.xlu0 %1560, %v363_v12   ;;  %v372_v36 = vld [vmem:[%s2043_s3 + $0x68] sm:$0xff]  ;;  %v373_v38 = vld [vmem:[%s2043_s3 + $0x70] sm:$0xff]  ;;  %v1505_v39 = vpack.c.bf16 %v474_v34, %v473_v33  ;;  %v475_v40 = vld [vmem:[%s2044_s4 + $0x20] sm:$0xff] }
  0x66   :  { %1387 = vmatprep.subr.bf16.mxu0 %v1565_v4  ;;  %402 = vperm.xlu1 %1561, %v364_v13   ;;  %v476_v41 = vld [vmem:[%s2044_s4 + $0x28] sm:$0xff]  ;;  %v137_v43 = vld [vmem:[#allocation3 + $0x10] sm:$0xff]  ;;  %v374_v44 = vld [vmem:[%s2043_s3 + $0x78] sm:$0xff] }
  0x67   :  { %1416 = vmatpush3.bf16.msra.mxu1 %v1571_v16  ;;  %v1575_v42 = vld [vmem:[#allocation9 + $0x28] sm:$0xff]   ;;  %v1576_v45 = vld [vmem:[#allocation9 + $0x30] sm:$0xff]   ;;  %v1509_v46 = vpack.c.bf16 %v476_v41, %v475_v40  ;;  %v478_v49 = vld [vmem:[%s2044_s4 + $0x38] sm:$0xff]  ;;  %v143_v50 = vunpack.c.l.s8.bf16 %v137_v43  ;;  %v144_v57 = vunpack.c.h.s8.bf16 %v137_v43 }
  0x68   :  { %1417 = vmatprep.subr.bf16.mxu1 %v1572_v20  ;;  %v477_v48 = vld [vmem:[%s2044_s4 + $0x30] sm:$0xff]  ;;  %v1577_v52 = vld [vmem:[#allocation9 + $0x38] sm:$0xff]   ;;  %v479_v53 = vld [vmem:[%s2044_s4 + $0x40] sm:$0xff] }
  0x69   :  { %1388 = vmatpush3.bf16.msra.mxu0 %v1565_v4  ;;  %407 = vperm.xlu0 %1560, %v365_v17   ;;  %v1513_v51 = vpack.c.bf16 %v478_v49, %v477_v48  ;;  %v480_v54 = vld [vmem:[%s2044_s4 + $0x48] sm:$0xff]  ;;  %v138_v55 = vld [vmem:[#allocation3 + $0x18] sm:$0xff]  ;;  %v481_v58 = vld [vmem:[%s2044_s4 + $0x50] sm:$0xff] }
  0x6a   :  { %1389 = vmatprep.subr.bf16.mxu0 %v1566_v11  ;;  %412 = vperm.xlu1 %1561, %v366_v18   ;;  %v1517_v56 = vpack.c.bf16 %v480_v54, %v479_v53  ;;  %v482_v59 = vld [vmem:[%s2044_s4 + $0x58] sm:$0xff]  ;;  %v145_v60 = vunpack.c.l.s8.bf16 %v138_v55  ;;  %v483_v62 = vld [vmem:[%s2044_s4 + $0x60] sm:$0xff]  ;;  %v484_v63 = vld [vmem:[%s2044_s4 + $0x68] sm:$0xff]  ;;  %v146_v2 = vunpack.c.h.s8.bf16 %v138_v55 }
  0x6b   :  { %1418 = vmatpush3.bf16.msra.mxu1 %v1572_v20  ;;  %v1521_v61 = vpack.c.bf16 %v482_v59, %v481_v58  ;;  %v1525_v1 = vpack.c.bf16 %v484_v63, %v483_v62  ;;  %v1578_v3 = vld [vmem:[#allocation8] sm:$0xff]   ;;  %v1579_v4 = vld [vmem:[#allocation8 + $0x8] sm:$0xff]   ;;  %v485_v5 = vld [vmem:[%s2044_s4 + $0x70] sm:$0xff] }
  0x6c   :  { %1419 = vmatprep.subr.bf16.mxu1 %v1573_v24  ;;  %v486_v6 = vld [vmem:[%s2044_s4 + $0x78] sm:$0xff]  ;;  %1429 = vmatprep.mubr.bf16.mxu1 %v1578_v3  ;;  %v1580_v8 = vld [vmem:[#allocation8 + $0x10] sm:$0xff]   ;;  %v1582_v10 = vld [vmem:[#allocation8 + $0x20] sm:$0xff]  }
  0x6d   :  { %1390 = vmatpush3.bf16.msra.mxu0 %v1566_v11  ;;  %417 = vperm.xlu0 %1560, %v367_v21   ;;  %v1529_v7 = vpack.c.bf16 %v486_v6, %v485_v5  ;;  %v1581_v9 = vld [vmem:[#allocation8 + $0x18] sm:$0xff]   ;;  %v1583_v11 = vld [vmem:[#allocation8 + $0x28] sm:$0xff]   ;;  %v1584_v12 = vld [vmem:[#allocation8 + $0x30] sm:$0xff]  }
  0x6e   :  { %1391 = vmatprep.subr.bf16.mxu0 %v1567_v15  ;;  %422 = vperm.xlu1 %1561, %v368_v22   ;;  %v1585_v13 = vld [vmem:[#allocation8 + $0x38] sm:$0xff]   ;;  %v1588_v14 = vld [vmem:[#allocation11 + $0x4] ss:$8 sps:$4 sm:$0xff]  }
  0x6f   :  { %1420 = vmatpush3.bf16.msra.mxu1 %v1573_v24  ;;  %v1591_v16 = vld [vmem:[#allocation11 + $0x14] ss:$8 sps:$4 sm:$0xff]   ;;  %v1589_v17 = vld [vmem:[#allocation11 + $0x10] ss:$8 sps:$4 sm:$0xff]   ;;  %v1594_v18 = vld [vmem:[#allocation11 + $0x24] ss:$8 sps:$4 sm:$0xff]  }
  0x70   :  { %1421 = vmatprep.subr.bf16.mxu1 %v1574_v30  ;;  %v1597_v20 = vld [vmem:[#allocation11 + $0x34] ss:$8 sps:$4 sm:$0xff]   ;;  %v1595_v21 = vld [vmem:[#allocation11 + $0x30] ss:$8 sps:$4 sm:$0xff]   ;;  %v1600_v22 = vld [vmem:[#allocation11 + $0x44] ss:$8 sps:$4 sm:$0xff]  }
  0x71   :  { %1392 = vmatpush3.bf16.msra.mxu0 %v1567_v15  ;;  %427 = vperm.xlu0 %1560, %v369_v25   ;;  %v1586_v15 = vld [vmem:[#allocation11] ss:$8 sps:$4 sm:$0xff]   ;;  %v1603_v24 = vld [vmem:[#allocation11 + $0x54] ss:$8 sps:$4 sm:$0xff]   ;;  %v1984_v25 = vld [vmem:[#allocation11 + $0x50] ss:$8 sps:$4 sm:$0xff]  }
  0x72   :  { %1393 = vmatprep.subr.bf16.mxu0 %v1568_v19  ;;  %432 = vperm.xlu1 %1561, %v370_v26  }
  0x73   :  { %1422 = vmatpush3.bf16.msra.mxu1 %v1574_v30 }
  0x74   :  { %1423 = vmatprep.subr.bf16.mxu1 %v1575_v42 }
  0x75   :  { %1394 = vmatpush3.bf16.msra.mxu0 %v1568_v19  ;;  %437 = vperm.xlu0 %1560, %v371_v32   ;;  %v1592_v19 = vld [vmem:[#allocation11 + $0x20] ss:$8 sps:$4 sm:$0xff]  }
  0x76   :  { %1395 = vmatprep.subr.bf16.mxu0 %v1569_v23  ;;  %442 = vperm.xlu1 %1561, %v372_v36  }
  0x77   :  { %1424 = vmatpush3.bf16.msra.mxu1 %v1575_v42 }
  0x78   :  { %1425 = vmatprep.subr.bf16.mxu1 %v1576_v45 }
  0x79   :  { %1396 = vmatpush3.bf16.msra.mxu0 %v1569_v23  ;;  %447 = vperm.xlu0 %1560, %v373_v38   ;;  %v1598_v23 = vld [vmem:[#allocation11 + $0x40] ss:$8 sps:$4 sm:$0xff]  }
  0x7a   :  { %1502 = vmatprep.subr.bf16.mxu0 %v1501_v31  ;;  %452 = vperm.xlu1 %1561, %v374_v44  }
  0x7b   :  { %1426 = vmatpush3.bf16.msra.mxu1 %v1576_v45 }
  0x7c   :  { %1398 = vmatmul.mubr.bf16.vlgmr.msra.gmra.mrb[0].mxu0 %v140_v35  ;;  %1427 = vmatprep.subr.bf16.mxu1 %v1577_v52 }
  0x7d   :  { %1401 = vmatprep.mubr.bf16.mxu0 %v141_v37  ;;  %1504 = vmatpush3.bf16.msra.mxu0 %v1501_v31 }
  0x7e   :  { %1506 = vmatprep.subr.bf16.mxu0 %v1505_v39 }
  0x7f   :  { %1428 = vmatpush3.bf16.msra.mxu1 %v1577_v52 }
  0x80   :  { %1533 = vmatprep.subr.bf16.mxu1 %v1588_v14 }
  0x81   :  { %1508 = vmatpush3.bf16.msra.mxu0 %v1505_v39 }
  0x82   :  { %1510 = vmatprep.subr.bf16.mxu0 %v1509_v46  ;;  %1430 = vmatmul.mubr.bf16.vlgmr.msra.gmra.mrb[0].mxu1 %v1579_v4 }
  0x83   :  { %1433 = vmatprep.mubr.bf16.mxu1 %v1580_v8  ;;  %1541 = vmatpush1.bf16.msra.mxu1 %v1586_v15 }
  0x84   :  { %1402 = vmatmul.mubr.bf16.gmra.mrb[4].mxu0 %v142_v47  ;;  %1534 = vmatprep.subr.bf16.mxu1 %v1591_v16 }
  0x85   :  { %1405 = vmatprep.mubr.bf16.mxu0 %v143_v50  ;;  %1512 = vmatpush3.bf16.msra.mxu0 %v1509_v46 }
  0x86   :  { %1514 = vmatprep.subr.bf16.mxu0 %v1513_v51 }
  0x87   :  { %1542 = vmatpush1.bf16.msra.mxu1 %v1589_v17 }
  0x88   :  { %1535 = vmatprep.subr.bf16.mxu1 %v1594_v18 }
  0x89   :  { %1516 = vmatpush3.bf16.msra.mxu0 %v1513_v51 }
  0x8a   :  { %1518 = vmatprep.subr.bf16.mxu0 %v1517_v56  ;;  %1434 = vmatmul.mubr.bf16.gmra.mrb[4].mxu1 %v1581_v9 }
  0x8b   :  { %1437 = vmatprep.mubr.bf16.mxu1 %v1582_v10  ;;  %1543 = vmatpush1.bf16.msra.mxu1 %v1592_v19 }
  0x8c   :  { %1406 = vmatmul.mubr.bf16.gmra.mrb[8].mxu0 %v144_v57  ;;  %1536 = vmatprep.subr.bf16.mxu1 %v1597_v20 }
  0x8d   :  { %1409 = vmatprep.mubr.bf16.mxu0 %v145_v60  ;;  %1520 = vmatpush3.bf16.msra.mxu0 %v1517_v56 }
  0x8e   :  { %1522 = vmatprep.subr.bf16.mxu0 %v1521_v61 }
  0x8f   :  { %1544 = vmatpush1.bf16.msra.mxu1 %v1595_v21 }
  0x90   :  { %1537 = vmatprep.subr.bf16.mxu1 %v1600_v22 }
  0x91   :  { %1524 = vmatpush3.bf16.msra.mxu0 %v1521_v61 }
  0x92   :  { %1526 = vmatprep.subr.bf16.mxu0 %v1525_v1  ;;  %1438 = vmatmul.mubr.bf16.gmra.mrb[8].mxu1 %v1583_v11 }
  0x93   :  { %1441 = vmatprep.mubr.bf16.mxu1 %v1584_v12  ;;  %1545 = vmatpush1.bf16.msra.mxu1 %v1598_v23 }
  0x94   :  { %1410 = vmatmul.mubr.bf16.gmra.mrb[12].mxu0 %v146_v2  ;;  %1538 = vmatprep.subr.bf16.mxu1 %v1603_v24 }
  0x95   :  { %1528 = vmatpush3.bf16.msra.mxu0 %v1525_v1 }
  0x96   :  { %1530 = vmatprep.subr.bf16.mxu0 %v1529_v7 }
  0x97   :  { %1546 = vmatpush1.bf16.msra.mxu1 %v1984_v25 }
  0x99   :  { %1532 = vmatpush3.bf16.msra.mxu0 %v1529_v7 }
  0x9a   :  { %1442 = vmatmul.mubr.bf16.gmra.mrb[12].mxu1 %v1585_v13  ;;  %1000 = vmatprep.subr.bf16.mxu0 %v1588_v14 }
  0x9b   :  { %1052 = vmatprep.mubr.bf16.mxu1 %v1759_v0 }
  0xdc   :  { %v378_v26 = vpop.permute.xlu0 %377 }
  0xdd   :  { %v388_v27 = vpop.permute.xlu1 %387 }
  0xe0   :  { %v383_v28 = vpop.permute.xlu0 %382 }
  0xe1   :  { %v393_v29 = vpop.permute.xlu1 %392 }
  0xe4   :  { %v398_v30 = vpop.permute.xlu0 %397 }
  0xe5   :  { %v403_v32 = vpop.permute.xlu1 %402 }
  0xe8   :  { %v408_v37 = vpop.permute.xlu0 %407 }
  0xe9   :  { %v413_v40 = vpop.permute.xlu1 %412 }
  0xec   :  { %v418_v44 = vpop.permute.xlu0 %417 }
  0xed   :  { %v423_v49 = vpop.permute.xlu1 %422 }
  0xf0   :  { %v428_v51 = vpop.permute.xlu0 %427 }
  0xf1   :  { %v433_v57 = vpop.permute.xlu1 %432 }
  0xf4   :  { %v438_v61 = vpop.permute.xlu0 %437 }
  0xf5   :  { %v443_v1 = vpop.permute.xlu1 %442 }
  0xf8   :  { %v448_v6 = vpop.permute.xlu0 %447 }
  0xf9   :  { %v453_v9 = vpop.permute.xlu1 %452 }
 0x14f   :  { %v1399_v31 = vpop.f32.mrb[0].mxu0 }
 0x150   :  { %v245_v33 = vpop.f32.mrb[1].mxu0  ;;  %v457_v39 = vmul.f32 %v1399_v31, %v388_v27 }
 0x151   :  { %v455_v34 = vmul.f32 %v378_v26, %v245_v33  ;;  %v1400_v35 = vpop.f32.mrb[2].mxu0 }
 0x152   :  { %v248_v36 = vpop.f32.mrb[3].mxu0  ;;  %v458_v41 = vmul.f32 %v1400_v35, %v393_v29 }
 0x153   :  { %v456_v38 = vmul.f32 %v383_v28, %v248_v36  ;;  %1477 = vmatprep.mubr.f32.mxu0 %v455_v34 }
 0x155   :  { %1478 = vmatmul.mubr.f32.vlgmr.msra.gmra.mrb[16].mxu0 %v456_v38  ;;  %v1431_v11 = vpop.f32.mrb[0].mxu1 }
 0x156   :  { %1480 = vmatprep.mubr.f32.mxu0 %v457_v39  ;;  %1001 = vmatpush1.bf16.msra.mxu0 %v1586_v15  ;;  %v649_v12 = vpop.f32.mrb[1].mxu1  ;;  %v1606_v15 = vld [vmem:[#allocation11 + $0x64] ss:$8 sps:$4 sm:$0xff]  }
 0x157   :  { %v1403_v42 = vpop.f32.mrb[4].mxu0  ;;  %1002 = vmatprep.subr.bf16.mxu0 %v1591_v16  ;;  %v1432_v13 = vpop.f32.mrb[2].mxu1  ;;  %v1604_v16 = vld [vmem:[#allocation11 + $0x60] ss:$8 sps:$4 sm:$0xff]   ;;  %1539 = vmatprep.subr.bf16.mxu1 %v1606_v15 }
 0x158   :  { %v261_v43 = vpop.f32.mrb[5].mxu0  ;;  %v461_v50 = vmul.f32 %v1403_v42, %v408_v37  ;;  %v652_v14 = vpop.f32.mrb[3].mxu1  ;;  %1547 = vmatpush1.bf16.msra.mxu1 %v1604_v16 }
 0x159   :  { %v459_v45 = vmul.f32 %v398_v30, %v261_v43  ;;  %v1404_v46 = vpop.f32.mrb[6].mxu0  ;;  %1481 = vmatmul.mubr.f32.gmra.mrb[18].mxu0 %v458_v41 }
 0x15a   :  { %v264_v47 = vpop.f32.mrb[7].mxu0  ;;  %1003 = vmatpush1.bf16.msra.mxu0 %v1589_v17  ;;  %v462_v52 = vmul.f32 %v1404_v46, %v413_v40 }
 0x15b   :  { %v460_v48 = vmul.f32 %v403_v32, %v264_v47  ;;  %1483 = vmatprep.mubr.f32.mxu0 %v459_v45  ;;  %1004 = vmatprep.subr.bf16.mxu0 %v1594_v18  ;;  %v1998_v32 = vld [vmem:[%s2046_s6] ss:$0 sm:$0xff]  ;;  %s1760_s6 = smov [#allocation12]  }
 0x15c   :  { %s1230_s12 = sshll.u32 %s1760_s6, 4  ;;  %s1231_s12 = int_to_ptr.vmem [resolvable:$true] %s1230_s12 }
 0x15d   :  { %1484 = vmatmul.mubr.f32.gmra.mrb[20].mxu0 %v460_v48  ;;  %v1435_v17 = vpop.f32.mrb[4].mxu1  ;;  %s1720_s13 = scalar_lea.vmem %s1231_s12, 2048  ;;  %p1725_p13 = scmp.lt.s32.totalorder %s1231_s12, %s1231_s12 }
 0x15e   :  { %1486 = vmatprep.mubr.f32.mxu0 %v461_v50  ;;  %1005 = vmatpush1.bf16.msra.mxu0 %v1592_v19  ;;  %v665_v18 = vpop.f32.mrb[5].mxu1  ;;  %v1609_v19 = vld [vmem:[#allocation11 + $0x74] ss:$8 sps:$4 sm:$0xff]   ;;  %p1721_p12 = scmp.ne.s32.totalorder %s1231_s12, %s1720_s13  ;;  %p1726_p0 = scmp.lt.s32.totalorder %s1720_s13, %s1720_s13 }
 0x15f   :  { %v1407_v53 = vpop.f32.mrb[8].mxu0  ;;  %1006 = vmatprep.subr.bf16.mxu0 %v1597_v20  ;;  %v1436_v20 = vpop.f32.mrb[6].mxu1  ;;  %1540 = vmatprep.subr.bf16.mxu1 %v1609_v19 }
 0x160   :  { %v277_v54 = vpop.f32.mrb[9].mxu0  ;;  %v465_v60 = vmul.f32 %v1407_v53, %v428_v51  ;;  %p1727_p1 = por %p1726_p0, %p1725_p13 }
 0x161   :  { %v463_v55 = vmul.f32 %v418_v44, %v277_v54  ;;  %v1408_v56 = vpop.f32.mrb[10].mxu0  ;;  %1487 = vmatmul.mubr.f32.gmra.mrb[22].mxu0 %v462_v52 }
 0x162   :  { %v280_v58 = vpop.f32.mrb[11].mxu0  ;;  %1007 = vmatpush1.bf16.msra.mxu0 %v1595_v21  ;;  %v466_v62 = vmul.f32 %v1408_v56, %v433_v57  ;;  %v1607_v21 = vld [vmem:[#allocation11 + $0x70] ss:$8 sps:$4 sm:$0xff]   ;;  %p1728_p2 = pnand %p1727_p1, %p1721_p12 }
 0x163   :  { %v464_v59 = vmul.f32 %v423_v49, %v280_v58  ;;  %1489 = vmatprep.mubr.f32.mxu0 %v463_v55  ;;  %1008 = vmatprep.subr.bf16.mxu0 %v1600_v22  ;;  %v668_v22 = vpop.f32.mrb[7].mxu1 }
 0x164   :  { %1548 = vmatpush1.bf16.msra.mxu1 %v1607_v21 }
 0x165   :  { %1490 = vmatmul.mubr.f32.gmra.mrb[24].mxu0 %v464_v59 }
 0x166   :  { %1492 = vmatprep.mubr.f32.mxu0 %v465_v60  ;;  %1009 = vmatpush1.bf16.msra.mxu0 %v1598_v23  ;;  %v1439_v23 = vpop.f32.mrb[8].mxu1 }
 0x167   :  { %v1411_v63 = vpop.f32.mrb[12].mxu0  ;;  %1010 = vmatprep.subr.bf16.mxu0 %v1603_v24  ;;  %v681_v24 = vpop.f32.mrb[9].mxu1 }
 0x168   :  { %v293_v2 = vpop.f32.mrb[13].mxu0  ;;  %v469_v8 = vmul.f32 %v1411_v63, %v448_v6 }
 0x169   :  { %v467_v3 = vmul.f32 %v438_v61, %v293_v2  ;;  %v1412_v4 = vpop.f32.mrb[14].mxu0  ;;  %1493 = vmatmul.mubr.f32.gmra.mrb[26].mxu0 %v466_v62 }
 0x16a   :  { %v296_v5 = vpop.f32.mrb[15].mxu0  ;;  %1011 = vmatpush1.bf16.msra.mxu0 %v1984_v25  ;;  %v470_v10 = vmul.f32 %v1412_v4, %v453_v9  ;;  %v1440_v25 = vpop.f32.mrb[10].mxu1 }
 0x16b   :  { %v468_v7 = vmul.f32 %v443_v1, %v296_v5  ;;  %1495 = vmatprep.mubr.f32.mxu0 %v467_v3  ;;  %1012 = vmatprep.subr.bf16.mxu0 %v1606_v15  ;;  %v684_v26 = vpop.f32.mrb[11].mxu1 }
 0x16d   :  { %1496 = vmatmul.mubr.f32.gmra.mrb[28].mxu0 %v468_v7  ;;  %v1989_v27 = vpop.f32.mrb[12].mxu1 }
 0x16e   :  { %1498 = vmatprep.mubr.f32.mxu0 %v469_v8  ;;  %1013 = vmatpush1.bf16.msra.mxu0 %v1604_v16  ;;  %v1991_v28 = vpop.f32.mrb[13].mxu1 }
 0x16f   :  { %1014 = vmatprep.subr.bf16.mxu0 %v1609_v19  ;;  %v1993_v29 = vpop.f32.mrb[14].mxu1 }
 0x170   :  { %v700_v30 = vpop.f32.mrb[15].mxu1 }
 0x171   :  { %1499 = vmatmul.mubr.f32.gmra.mrb[30].mxu0 %v470_v10 }
 0x172   :  { %1032 = vmatprep.mubr.bf16.mxu0 %v1759_v0  ;;  %1015 = vmatpush1.bf16.msra.mxu0 %v1607_v21 }
 0x228   :  { %v1479_v31 = vpop.f32.mrb[16].mxu0 }
 0x229   :  { %v784_v33 = vadd.f32 %v1479_v31, %v652_v14  ;;  %v778_v34 = vpop.f32.mrb[17].mxu0 }
 0x22a   :  { %v779_v35 = vadd.f32 %v778_v34, %v649_v12 }
 0x22b   :  { %v865_v36 = vadd.f32 %v1998_v32, %v784_v33 }
 0x22c   :  { %v864_v37 = vadd.f32 %v1998_v32, %v779_v35  ;;  %v1482_v38 = vpop.f32.mrb[18].mxu0 }
 0x22d   :  { %v881_v39 = vmax.f32 %v865_v36, 0.0  ;;  %v794_v40 = vadd.f32 %v1482_v38, %v1432_v13  ;;  %v788_v41 = vpop.f32.mrb[19].mxu0 }
 0x22e   :  { %v880_v42 = vmax.f32 %v864_v37, 0.0  ;;  %v789_v43 = vadd.f32 %v1431_v11, %v788_v41 }
 0x22f   :  { %v867_v44 = vadd.f32 %v1998_v32, %v794_v40 }
 0x230   :  { %v896_v45 = vpack.c.bf16 %v881_v39, %v880_v42  ;;  %v866_v46 = vadd.f32 %v1998_v32, %v789_v43  ;;  %v1485_v47 = vpop.f32.mrb[20].mxu0 }
 0x231   :  { %v883_v48 = vmax.f32 %v867_v44, 0.0  ;;  %v804_v49 = vadd.f32 %v1485_v47, %v668_v22  ;;  %v798_v50 = vpop.f32.mrb[21].mxu0 }
 0x232   :  { %v882_v51 = vmax.f32 %v866_v46, 0.0  ;;  %v799_v52 = vadd.f32 %v798_v50, %v665_v18  ;;  %1033 = vmatmul.mubr.bf16.vlgmr.msra.gmra.mrb[32].mxu0 %v896_v45 }
 0x233   :  { %v869_v53 = vadd.f32 %v1998_v32, %v804_v49  ;;  %1042 = vmatprep.mubr.bf16.mxu0 %v1759_v0 }
 0x234   :  { %v868_v54 = vadd.f32 %v1998_v32, %v799_v52  ;;  %v1488_v55 = vpop.f32.mrb[22].mxu0  ;;  %v897_v56 = vpack.c.bf16 %v883_v48, %v882_v51 }
 0x235   :  { %v885_v57 = vmax.f32 %v869_v53, 0.0  ;;  %v814_v58 = vadd.f32 %v1488_v55, %v1436_v20  ;;  %v808_v59 = vpop.f32.mrb[23].mxu0 }
 0x236   :  { %v884_v60 = vmax.f32 %v868_v54, 0.0  ;;  %v809_v61 = vadd.f32 %v1435_v17, %v808_v59 }
 0x237   :  { %v871_v62 = vadd.f32 %v1998_v32, %v814_v58 }
 0x238   :  { %v898_v63 = vpack.c.bf16 %v885_v57, %v884_v60  ;;  %v870_v1 = vadd.f32 %v1998_v32, %v809_v61  ;;  %v1491_v2 = vpop.f32.mrb[24].mxu0 }
 0x239   :  { %v887_v3 = vmax.f32 %v871_v62, 0.0  ;;  %v824_v4 = vadd.f32 %v1491_v2, %v684_v26  ;;  %v818_v5 = vpop.f32.mrb[25].mxu0 }
 0x23a   :  { %v886_v6 = vmax.f32 %v870_v1, 0.0  ;;  %v819_v7 = vadd.f32 %v818_v5, %v681_v24  ;;  %1043 = vmatmul.mubr.bf16.gmra.mrb[36].mxu0 %v897_v56  ;;  %1053 = vmatmul.mubr.bf16.vlgmr.msra.gmra.mrb[16].mxu1 %v898_v63 }
 0x23b   :  { %v873_v8 = vadd.f32 %v1998_v32, %v824_v4  ;;  %1062 = vmatprep.mubr.bf16.mxu1 %v1759_v0 }
 0x23c   :  { %v872_v9 = vadd.f32 %v1998_v32, %v819_v7  ;;  %v1494_v10 = vpop.f32.mrb[26].mxu0  ;;  %v899_v11 = vpack.c.bf16 %v887_v3, %v886_v6 }
 0x23d   :  { %v889_v12 = vmax.f32 %v873_v8, 0.0  ;;  %v834_v13 = vadd.f32 %v1494_v10, %v1440_v25  ;;  %v828_v14 = vpop.f32.mrb[27].mxu0 }
 0x23e   :  { %v888_v15 = vmax.f32 %v872_v9, 0.0  ;;  %v829_v16 = vadd.f32 %v1439_v23, %v828_v14 }
 0x23f   :  { %v875_v17 = vadd.f32 %v1998_v32, %v834_v13 }
 0x240   :  { %v874_v18 = vadd.f32 %v1998_v32, %v829_v16  ;;  %v1497_v19 = vpop.f32.mrb[28].mxu0  ;;  %v900_v20 = vpack.c.bf16 %v889_v12, %v888_v15 }
 0x241   :  { %v891_v21 = vmax.f32 %v875_v17, 0.0  ;;  %v844_v22 = vadd.f32 %v1497_v19, %v700_v30  ;;  %v838_v24 = vpop.f32.mrb[29].mxu0 }
 0x242   :  { %v890_v26 = vmax.f32 %v874_v18, 0.0  ;;  %v839_v31 = vadd.f32 %v838_v24, %v1991_v28  ;;  %1063 = vmatmul.mubr.bf16.gmra.mrb[20].mxu1 %v899_v11 }
 0x243   :  { %v877_v33 = vadd.f32 %v1998_v32, %v844_v22  ;;  %1072 = vmatprep.mubr.bf16.mxu1 %v1759_v0 }
 0x244   :  { %v876_v25 = vadd.f32 %v1998_v32, %v839_v31  ;;  %v1500_v23 = vpop.f32.mrb[30].mxu0  ;;  %v901_v34 = vpack.c.bf16 %v891_v21, %v890_v26 }
 0x245   :  { %v893_v35 = vmax.f32 %v877_v33, 0.0  ;;  %v854_v36 = vadd.f32 %v1500_v23, %v1993_v29  ;;  %v848_v37 = vpop.f32.mrb[31].mxu0 }
 0x246   :  { %v892_v38 = vmax.f32 %v876_v25, 0.0  ;;  %v849_v30 = vadd.f32 %v1989_v27, %v848_v37 }
 0x247   :  { %v879_v39 = vadd.f32 %v1998_v32, %v854_v36 }
 0x248   :  { %v878_v28 = vadd.f32 %v1998_v32, %v849_v30  ;;  %v902_v40 = vpack.c.bf16 %v893_v35, %v892_v38 }
 0x249   :  { %v895_v41 = vmax.f32 %v879_v39, 0.0 }
 0x24a   :  { %v894_v42 = vmax.f32 %v878_v28, 0.0  ;;  %1073 = vmatmul.mubr.bf16.gmra.mrb[24].mxu1 %v900_v20 }
 0x24b   :  { %1082 = vmatprep.mubr.bf16.mxu1 %v1759_v0 }
 0x24c   :  { %v903_v43 = vpack.c.bf16 %v895_v41, %v894_v42 }
 0x252   :  { %1083 = vmatmul.mubr.bf16.gmra.mrb[28].mxu1 %v901_v34 }
 0x253   :  { %1092 = vmatprep.mubr.bf16.mxu1 %v1759_v0 }
 0x25a   :  { %1093 = vmatmul.mubr.bf16.gmra.mrb[32].mxu1 %v902_v40 }
 0x25b   :  { %1102 = vmatprep.mubr.bf16.mxu1 %v1759_v0 }
 0x262   :  { %1103 = vmatmul.mubr.bf16.gmra.mrb[36].mxu1 %v903_v43 }
 0x305   :  { %v1034_v29 = vpop.f32.mrb[32].mxu0 }
 0x306   :  { %v1036_v27 = vpop.f32.mrb[33].mxu0 }
 0x307   :  { %v1301_v44 = vpack.c.bf16 %v1036_v27, %v1034_v29  ;;  %v1038_v45 = vpop.f32.mrb[34].mxu0 }
 0x308   :  { %v1040_v46 = vpop.f32.mrb[35].mxu0 }
 0x309   :  { %1209 = vst [vmem:[#allocation12] sm:$0xff] %v1301_v44  ;;  %v1302_v32 = vpack.c.bf16 %v1040_v46, %v1038_v45 }
 0x30b   :  { %1210 = vst [vmem:[#allocation12 + $0x8] sm:$0xff] %v1302_v32 }
 0x30d   :  { %v1044_v47 = vpop.f32.mrb[36].mxu0  ;;  %v1054_v48 = vpop.f32.mrb[16].mxu1 }
 0x30e   :  { %v1046_v49 = vpop.f32.mrb[37].mxu0  ;;  %v1056_v50 = vpop.f32.mrb[17].mxu1 }
 0x30f   :  { %v1303_v51 = vpack.c.bf16 %v1046_v49, %v1044_v47  ;;  %v1305_v52 = vpack.c.bf16 %v1056_v50, %v1054_v48  ;;  %v1048_v53 = vpop.f32.mrb[38].mxu0  ;;  %v1058_v54 = vpop.f32.mrb[18].mxu1 }
 0x310   :  { %v1050_v55 = vpop.f32.mrb[39].mxu0  ;;  %v1060_v56 = vpop.f32.mrb[19].mxu1 }
 0x311   :  { %1211 = vst [vmem:[#allocation12 + $0x10] sm:$0xff] %v1303_v51  ;;  %1213 = vst [vmem:[#allocation12 + $0x20] sm:$0xff] %v1305_v52  ;;  %v1304_v0 = vpack.c.bf16 %v1050_v55, %v1048_v53  ;;  %v1306_v57 = vpack.c.bf16 %v1060_v56, %v1058_v54 }
 0x313   :  { %1212 = vst [vmem:[#allocation12 + $0x18] sm:$0xff] %v1304_v0  ;;  %1214 = vst [vmem:[#allocation12 + $0x28] sm:$0xff] %v1306_v57 }
 0x315   :  { %v1064_v58 = vpop.f32.mrb[20].mxu1 }
 0x316   :  { %v1066_v59 = vpop.f32.mrb[21].mxu1 }
 0x317   :  { %v1307_v60 = vpack.c.bf16 %v1066_v59, %v1064_v58  ;;  %v1068_v61 = vpop.f32.mrb[22].mxu1 }
 0x318   :  { %v1070_v62 = vpop.f32.mrb[23].mxu1 }
 0x319   :  { %1215 = vst [vmem:[#allocation12 + $0x30] sm:$0xff] %v1307_v60  ;;  %v1308_v63 = vpack.c.bf16 %v1070_v62, %v1068_v61 }
 0x31b   :  { %1216 = vst [vmem:[#allocation12 + $0x38] sm:$0xff] %v1308_v63 }
 0x31d   :  { %v1074_v1 = vpop.f32.mrb[24].mxu1 }
 0x31e   :  { %v1076_v2 = vpop.f32.mrb[25].mxu1 }
 0x31f   :  { %v1309_v3 = vpack.c.bf16 %v1076_v2, %v1074_v1  ;;  %v1078_v4 = vpop.f32.mrb[26].mxu1 }
 0x320   :  { %v1080_v5 = vpop.f32.mrb[27].mxu1 }
 0x321   :  { %1217 = vst [vmem:[#allocation12 + $0x40] sm:$0xff] %v1309_v3  ;;  %v1310_v6 = vpack.c.bf16 %v1080_v5, %v1078_v4 }
 0x323   :  { %1218 = vst [vmem:[#allocation12 + $0x48] sm:$0xff] %v1310_v6 }
 0x325   :  { %v1084_v7 = vpop.f32.mrb[28].mxu1 }
 0x326   :  { %v1086_v8 = vpop.f32.mrb[29].mxu1 }
 0x327   :  { %v1311_v9 = vpack.c.bf16 %v1086_v8, %v1084_v7  ;;  %v1088_v10 = vpop.f32.mrb[30].mxu1 }
 0x328   :  { %v1090_v11 = vpop.f32.mrb[31].mxu1 }
 0x329   :  { %1219 = vst [vmem:[#allocation12 + $0x50] sm:$0xff] %v1311_v9  ;;  %v1312_v12 = vpack.c.bf16 %v1090_v11, %v1088_v10 }
 0x32b   :  { %1220 = vst [vmem:[#allocation12 + $0x58] sm:$0xff] %v1312_v12 }
 0x32d   :  { %v1094_v13 = vpop.f32.mrb[32].mxu1 }
 0x32e   :  { %v1096_v14 = vpop.f32.mrb[33].mxu1 }
 0x32f   :  { %v1313_v15 = vpack.c.bf16 %v1096_v14, %v1094_v13  ;;  %v1098_v16 = vpop.f32.mrb[34].mxu1 }
 0x330   :  { %v1100_v17 = vpop.f32.mrb[35].mxu1 }
 0x331   :  { %1221 = vst [vmem:[#allocation12 + $0x60] sm:$0xff] %v1313_v15  ;;  %v1314_v18 = vpack.c.bf16 %v1100_v17, %v1098_v16 }
 0x333   :  { %1222 = vst [vmem:[#allocation12 + $0x68] sm:$0xff] %v1314_v18 }
 0x335   :  { %v1104_v19 = vpop.f32.mrb[36].mxu1 }
 0x336   :  { %v1106_v20 = vpop.f32.mrb[37].mxu1 }
 0x337   :  { %v1315_v21 = vpack.c.bf16 %v1106_v20, %v1104_v19  ;;  %v1108_v22 = vpop.f32.mrb[38].mxu1 }
 0x338   :  { %v1110_v24 = vpop.f32.mrb[39].mxu1 }
 0x339   :  { %1223 = vst [vmem:[#allocation12 + $0x70] sm:$0xff] %v1315_v21  ;;  %v1316_v26 = vpack.c.bf16 %v1110_v24, %v1108_v22 }
 0x33b   :  { %1224 = vst [vmem:[#allocation12 + $0x78] sm:$0xff] %v1316_v26 }
 0x33c   :  { %1731 = shalt.err (!%p1728_p2)
}
 0x33d   :  { %s1732_s18 = scalar_lea.hbm %s2048_s8, 2048 }
 0x33e   :  { %p1733_p3 = scmp.ne.s32.totalorder %s2048_s8, %s1732_s18  ;;  %p1736_p4 = scmp.lt.u32.totalorder %s1732_s18, %s2048_s8 }
 0x340   :  { %p1738_p5 = pnand %p1736_p4, %p1733_p3 }
 0x342   :  { %1741 = shalt.err (!%p1738_p5)
}
 0x343   :  { %1236 = dma.vmem_to_hbm [thread:$0]  %s1231_s12, 2048, %s2048_s8, [#allocation5], %s1755_s5, %s1755_s5, %s1756_s20  }
 0x344   :  { %1748 = dma.done.wait [#allocation5], 2048  }
 0x345   :  { %1749 = vsyncadd [#allocation5], 4294965248 }
 0x346   :  { %1240 = vsyncpa [#allocation4], 1 }
 0x347   :  { %1241 = vsyncpa [#allocation7], 1 }
 0x348   :  { %1242 = vsyncpa [#allocation10], 1 }
 0x349   :  { %1243 = vsyncpa [#allocation5], 1 }

</bundles_post_ra>
